<compile_context>
chip_gen: v5e
topology: v5e:2x2
jax: 0.10.0
libtpu: 0.0.40
codegen_flags: <defaults>
</compile_context>

<pallas_src>
import jax
import jax.numpy as jnp
import numpy as np
from jax.experimental import pallas as pl
from jax.experimental.pallas import tpu as pltpu

# ---- static model hyper-parameters (from the torch module) -------------------
KH, KW = 11, 1          # Conv2d kernel
SH, SW = 3, 2           # Conv2d stride
PH, PW = 1, 3           # Conv2d padding
KT, ST, PT = 3, 3, 2    # ConvTranspose1d kernel / stride / padding

H_IN = W_IN = 32
H_PAD = H_IN + 2 * PH                 # 34
W_PAD = W_IN + 2 * PW                 # 38
H_OUT = (H_PAD - KH) // SH + 1        # 8
W_OUT = (W_PAD - KW) // SW + 1        # 19
L_IN = H_OUT * W_OUT                  # 152
L_OUT = (L_IN - 1) * ST - 2 * PT + KT # 452
C_ROW = ST * W_OUT                    # 57 deconv outputs per conv row (pre-crop)
C_PAD = 128                           # lane-dense padded output width


# ---- fused Pallas kernel ------------------------------------------------------
def _fused_kernel(x_ref, wband_ref, g2_ref, bias_ref, o_ref):
    f32 = jnp.float32
    rowconv = jnp.dot(wband_ref[...], x_ref[...], preferred_element_type=f32)   # (8, 32)
    z = jnp.dot(rowconv, g2_ref[...], preferred_element_type=f32) + bias_ref[...]  # (8,128)
    o_ref[...] = jax.nn.sigmoid(z)


# ---- weight prep (hoisted: run once per weight set, not per forward call) -----
def prepare_params(conv_w, conv_b, convt_w, convt_b):
    """Build the fused band matrices wband (8,32), G2 (32,128), bias (1,128)."""
    w1 = jnp.asarray(conv_w, jnp.float32).reshape(KH)        # 11 conv taps
    b1 = jnp.asarray(conv_b, jnp.float32).reshape(())
    wt = jnp.asarray(convt_w, jnp.float32).reshape(KT)       # 3 deconv taps
    b2 = jnp.asarray(convt_b, jnp.float32).reshape(())

    # Vertical band: wband[oh, h] = w1[h + PH - SH*oh] (zero outside the 11 taps).
    oh = np.arange(H_OUT)[:, None]
    hh = np.arange(H_IN)[None, :]
    tap = hh + PH - SH * oh                                   # (8,32) int
    tap_valid = (tap >= 0) & (tap < KH)
    wband = jnp.where(jnp.asarray(tap_valid),
                      w1[jnp.asarray(np.clip(tap, 0, KH - 1))], 0.0)

    # Horizontal stride-2 column pick (kernel width 1, padded cols -> 0):
    # sel[w, ow] = 1 if w == SW*ow - PW.  Weight-independent numpy constant.
    ww = np.arange(W_IN)[:, None]
    ow = np.arange(W_OUT)[None, :]
    sel = (ww == SW * ow - PW).astype(np.float32)             # (32,19)

    # ConvTranspose1d interleave band: g[ow, c] = wt[c - ST*ow], 0 <= c-ST*ow < KT.
    qq = np.arange(W_OUT)[:, None]
    cc = np.arange(C_PAD)[None, :]
    rr = cc - ST * qq
    g_valid = (rr >= 0) & (rr < KT)
    g = jnp.where(jnp.asarray(g_valid),
                  wt[jnp.asarray(np.clip(rr, 0, KT - 1))], 0.0)  # (19,128)

    # Fold: z = ((wband @ x) @ sel) @ g + b1*colsum(g) + b2 = (wband @ x) @ G2 + bias.
    g2 = jnp.asarray(sel) @ g                                 # (32,128)
    bias_vec = (b1 * jnp.sum(g, axis=0) + b2).reshape(1, C_PAD)
    return wband, g2, bias_vec


_COST = pl.CostEstimate(
    flops=2 * (H_OUT * H_IN * W_IN + H_OUT * W_IN * C_PAD),
    transcendentals=H_OUT * C_PAD,
    bytes_accessed=4 * (H_IN * W_IN + H_OUT * H_IN + H_IN * C_PAD
                        + C_PAD + H_OUT * C_PAD),
)


# ---- forward pass -------------------------------------------------------------
@jax.jit
def model_forward(x, wband, g2, bias_vec):
    x2d = x.reshape(H_IN, W_IN).astype(jnp.float32)
    z = pl.pallas_call(
        _fused_kernel,
        out_shape=jax.ShapeDtypeStruct((H_OUT, C_PAD), jnp.float32),
        in_specs=[pl.BlockSpec(memory_space=pltpu.MemorySpace.VMEM),
                  pl.BlockSpec(memory_space=pltpu.MemorySpace.VMEM),
                  pl.BlockSpec(memory_space=pltpu.MemorySpace.VMEM),
                  pl.BlockSpec(memory_space=pltpu.MemorySpace.VMEM)],
        out_specs=pl.BlockSpec(memory_space=pltpu.MemorySpace.VMEM),
        cost_estimate=_COST,
    )(x2d, wband, g2, bias_vec)
    # TODO(synk): PyTorch's ConvTranspose1d rejects the 4D Conv2d output at runtime;
    # we flatten (H, W) -> L so the transposed conv is well defined.
    v3 = z[:, :C_ROW].reshape(-1)[PT:PT + L_OUT]   # crop the deconv padding (PT each side)
    return v3.reshape(1, 1, L_OUT)


# ---- numpy reference (loop implementation of the same semantics) --------------
def reference_forward(x, conv_w, conv_b, convt_w, convt_b):
    x2d = np.asarray(x, np.float64)[0, 0]
    xp = np.pad(x2d, ((PH, PH), (PW, PW)))
    w_h = np.asarray(conv_w, np.float64)[0, 0, :, 0]
    v1 = np.zeros((H_OUT, W_OUT), np.float64)
    for oh in range(H_OUT):
        for ow in range(W_OUT):
            s = 0.0
            for kh in range(KH):
                s += xp[oh * SH + kh, ow * SW] * w_h[kh]
            v1[oh, ow] = s + float(conv_b[0])
    xin = v1.reshape(-1)
    wt = np.asarray(convt_w, np.float64)[0, 0]
    v2 = np.full(L_OUT, float(convt_b[0]), np.float64)
    for i in range(L_IN):
        for j in range(KT):
            l = i * ST - PT + j
            if 0 <= l < L_OUT:
                v2[l] += xin[i] * wt[j]
    return (1.0 / (1.0 + np.exp(-v2))).reshape(1, 1, L_OUT)


if __name__ == "__main__":
    keys = jax.random.split(jax.random.PRNGKey(0), 5)
    conv_w = jax.random.normal(keys[0], (1, 1, KH, KW), jnp.float32) * 0.3
    conv_b = jax.random.normal(keys[1], (1,), jnp.float32) * 0.1
    convt_w = jax.random.normal(keys[2], (1, 1, KT), jnp.float32) * 0.5
    convt_b = jax.random.normal(keys[3], (1,), jnp.float32) * 0.1
    x1 = jax.random.normal(keys[4], (1, 1, H_IN, W_IN), jnp.float32)

    # Hoisted weight prep: band matrices built once, outside the kernel.
    wband, g2, bias_vec = jax.block_until_ready(
        prepare_params(conv_w, conv_b, convt_w, convt_b))

    out = jax.block_until_ready(model_forward(x1, wband, g2, bias_vec))

    ref = reference_forward(np.asarray(x1), np.asarray(conv_w), np.asarray(conv_b),
                            np.asarray(convt_w), np.asarray(convt_b))
    np.testing.assert_allclose(np.asarray(out), ref, rtol=1e-4, atol=1e-5)
    assert out.shape == (1, 1, L_OUT)
    print("KERNEL_OK")
</pallas_src>

<mosaic_0001>
module attributes {stable_mosaic.version = 11 : i64} {
  func.func @_fused_kernel(%arg0: memref<32x32xf32, #tpu.memory_space<vmem>>, %arg1: memref<8x32xf32, #tpu.memory_space<vmem>>, %arg2: memref<32x128xf32, #tpu.memory_space<vmem>>, %arg3: memref<1x128xf32, #tpu.memory_space<vmem>>, %arg4: memref<8x128xf32, #tpu.memory_space<vmem>>) attributes {dimension_semantics = [], scalar_prefetch = 0 : i64, scratch_operands = 0 : i64, tpu.core_type = #tpu.core_type<tc>} {
    %c0 = arith.constant 0 : index
    %c0_0 = arith.constant 0 : index
    %0 = vector.load %arg1[%c0, %c0_0] : memref<8x32xf32, #tpu.memory_space<vmem>>, vector<8x32xf32>
    %c0_1 = arith.constant 0 : index
    %c0_2 = arith.constant 0 : index
    %1 = vector.load %arg0[%c0_1, %c0_2] : memref<32x32xf32, #tpu.memory_space<vmem>>, vector<32x32xf32>
    %cst = arith.constant dense<0.000000e+00> : vector<8x32xf32>
    %2 = tpu.matmul %0, %1, %cst {dimension_numbers = #tpu.dot_dimension_numbers<[1], [0], [0], [1], [0, 0, 1, 1], [], []>} : vector<8x32xf32>, vector<32x32xf32>, vector<8x32xf32> -> vector<8x32xf32>
    %c0_3 = arith.constant 0 : index
    %c0_4 = arith.constant 0 : index
    %3 = vector.load %arg2[%c0_3, %c0_4] : memref<32x128xf32, #tpu.memory_space<vmem>>, vector<32x128xf32>
    %cst_5 = arith.constant dense<0.000000e+00> : vector<8x128xf32>
    %4 = tpu.matmul %2, %3, %cst_5 {dimension_numbers = #tpu.dot_dimension_numbers<[1], [0], [0], [1], [0, 0, 1, 1], [], []>} : vector<8x32xf32>, vector<32x128xf32>, vector<8x128xf32> -> vector<8x128xf32>
    %c0_6 = arith.constant 0 : index
    %c0_7 = arith.constant 0 : index
    %5 = vector.load %arg3[%c0_6, %c0_7] : memref<1x128xf32, #tpu.memory_space<vmem>>, vector<1x128xf32>
    %6 = vector.broadcast %5 : vector<1x128xf32> to vector<8x128xf32>
    %7 = arith.addf %4, %6 : vector<8x128xf32>
    %8 = arith.negf %7 : vector<8x128xf32>
    %9 = math.exp %8 : vector<8x128xf32>
    %cst_8 = arith.constant 1.000000e+00 : f32
    %10 = vector.broadcast %cst_8 : f32 to vector<8x128xf32>
    %11 = arith.addf %10, %9 : vector<8x128xf32>
    %12 = arith.divf %10, %11 : vector<8x128xf32>
    %c0_9 = arith.constant 0 : index
    %c0_10 = arith.constant 0 : index
    %13 = vector.load %arg4[%c0_9, %c0_10] : memref<8x128xf32, #tpu.memory_space<vmem>>, vector<8x128xf32>
    tpu.vector_store %arg4[%c0_9, %c0_10], %12 {strides = array<i32>} : memref<8x128xf32, #tpu.memory_space<vmem>>, vector<8x128xf32>,
    return
  }
}

</mosaic_0001>

<bundles_post_ra>
// kernel: model_forward.1
= control target key start
LH: loop header
LB: loop body
LE: loop exit
PB: predicated region body
PF: predicated region fallthrough
CT: control target
= control target key end

     0   :  { %9 = vsyncpa [#allocation3], 0  ;;  %s282_s0 = inlined_call_operand.hbm [shape: f32[32,32], index: 0, kind: input, shape index: {}]   ;;  %s283_s1 = inlined_call_operand.hbm [shape: f32[8,32], index: 1, kind: input, shape index: {}]   ;;  %s284_s2 = inlined_call_operand.hbm [shape: f32[32,128], index: 2, kind: input, shape index: {}]   ;;  %s285_s3 = inlined_call_operand.vmem [shape: f32[1,128], index: 3, kind: input, shape index: {}]   ;;  %s286_s4 = inlined_call_operand.vmem [shape: f32[8,128], index: 4, kind: output, shape index: {}]  }
   0x1   :  { %10 = vsyncpa [#allocation5], 0  ;;  %s29_s17 = sshll.u32 %s283_s1, 4  ;;  %s237_s18 = smov [#allocation4]   ;;  %s30_s17 = int_to_ptr.hbm [resolvable:$true] %s29_s17 }
   0x2   :  { %s31_s19 = sshll.u32 %s237_s18, 4  ;;  %s15_s22 = sshll.u32 %s282_s0, 4  ;;  %s32_s19 = int_to_ptr.vmem [resolvable:$true] %s31_s19  ;;  %s16_s22 = int_to_ptr.hbm [resolvable:$true] %s15_s22 }
   0x3   :  { %34 = dma.hbm_to_vmem [thread:$0]  %s30_s17, 128, %s32_s19, [#allocation5]  }
   0x4   :  { %s238_s23 = smov [#allocation2]   ;;  %s239_s25 = smov 128  }
   0x5   :  { %s17_s24 = sshll.u32 %s238_s23, 4  ;;  %s240_s26 = smov 8   ;;  %s18_s24 = int_to_ptr.vmem [resolvable:$true] %s17_s24 }
   0x6   :  { %23 = dma.hbm_to_vmem [thread:$0]  %s16_s22, 512, %s18_s24, [#allocation3], %s239_s25, %s239_s25, %s240_s26  }
   0x7   :  { %s39_s1 = sshll.u32 %s284_s2, 4  ;;  %s241_s29 = smov [#allocation6]   ;;  %s40_s1 = int_to_ptr.hbm [resolvable:$true] %s39_s1 }
   0x8   :  { %s41_s30 = sshll.u32 %s241_s29, 4  ;;  %s42_s30 = int_to_ptr.vmem [resolvable:$true] %s41_s30 }
   0x9   :  { %47 = dma.hbm_to_vmem [thread:$0]  %s40_s1, 512, %s42_s30, [#allocation5], %s239_s25, %s239_s25, %s240_s26  }
   0xa   :  { %233 = dma.done.wait [#allocation3], 512  }
   0xb   :  { %234 = vsyncadd [#allocation3], 4294966784 }
   0xc   :  { %235 = dma.done.wait [#allocation5], 640  }
   0xd   :  { %236 = vsyncadd [#allocation5], 4294966656  ;;  %v66_v0 = vld [vmem:[#allocation2 + $0x18] sm:$0xff]  ;;  %v65_v1 = vld [vmem:[#allocation2 + $0x10] sm:$0xff]  ;;  %vm67_vm0 = vcmask 261120  }
   0xe   :  { %83 = vmatpush.msra.mxu0 %v66_v0  ;;  %v94_v2 = vld [vmem:[#allocation6 + $0x18] sm:$0xff]  ;;  %v64_v3 = vld [vmem:[#allocation2 + $0x8] sm:$0xff]  ;;  %v93_v4 = vld [vmem:[#allocation6 + $0x10] sm:$0xff] }
   0xf   :  { %114 = vmatpush.msra.mxu1 %v94_v2  ;;  %v92_v5 = vld [vmem:[#allocation6 + $0x8] sm:$0xff]  ;;  %v63_v6 = vld [vmem:[#allocation2] sm:$0xff]  ;;  %v91_v8 = vld [vmem:[#allocation6] sm:$0xff] }
  0x10   :  { %84 = vmatpush.msra.mxu0 %v65_v1  ;;  %v62_v7 = vld [vmem:[#allocation4] sm:$0xff] }
  0x11   :  { %115 = vmatpush.msra.mxu1 %v93_v4  ;;  %v156_v10 = vld [vmem:[%s285_s3] ss:$0 sm:$0xff] }
  0x12   :  { %85 = vmatpush.msra.mxu0 %v64_v3 }
  0x13   :  { %116 = vmatpush.msra.mxu1 %v92_v5 }
  0x14   :  { %86 = vmatpush.msra.mxu0 %v63_v6 }
  0x15   :  { %148 = vmatmul.msk.f32.vlgmr.msra.gmra.mxu0 %vm67_vm0, %v62_v7  ;;  %117 = vmatpush.msra.mxu1 %v91_v8 }
  0x92   :  { %v88_v9 = vpop.f32.mrf.mxu0 }
  0x93   :  { %149 = vmatmul.msk.f32.vlgmr.msra.gmra.mxu1 %vm67_vm0, %v88_v9 }
 0x110   :  { %v119_v11 = vpop.f32.mrf.mxu1 }
 0x111   :  { %v120_v12 = vadd.f32 %v156_v10, %v119_v11 }
 0x113   :  { %v150_v13 = vmul.f32 -1.442695, %v120_v12 }
 0x115   :  { %157 = vpow2.f32 %v150_v13 }
 0x11b   :  { %v158_v14 = vpop.eup %157 }
 0x11c   :  { %v125_v15 = vadd.f32 1.0, %v158_v14 }
 0x11e   :  { %159 = vrcp.f32 %v125_v15  ;;  %v137_v19 = vand.u32 2147483648, %v125_v15  ;;  %v135_v21 = vand.u32 2147483647, %v125_v15  ;;  %vm131_vm2 = vweird.f32 %v125_v15 }
 0x120   :  { %v138_v23 = vor.u32 1.1754944e-38, %v137_v19  ;;  %vm136_vm4 = vcmp.eq.f32.partialorder %v135_v21, 8.507059e+37 }
 0x124   :  { %v160_v16 = vpop.eup %159 }
 0x125   :  { %v127_v17 = vmul.f32 %v160_v16, %v125_v15  ;;  %vm132_vm1 = vweird.f32 %v160_v16 }
 0x126   :  { %vm133_vm3 = vmor %vm131_vm2, %vm132_vm1 }
 0x127   :  { %v128_v18 = vsub.f32 1.0, %v127_v17 }
 0x129   :  { %v129_v20 = vmul.f32 %v160_v16, %v128_v18 }
 0x12b   :  { %v130_v22 = vadd.f32 %v160_v16, %v129_v20 }
 0x12d   :  { %v134_v24 = vsel %vm133_vm3, %v160_v16, %v130_v22 }
 0x12e   :  { %v139_v25 = vsel %vm136_vm4, %v138_v23, %v134_v24 }
 0x12f   :  { %141 = vst [vmem:[%s286_s4] sm:$0xff] %v139_v25 }
 0x130   :  { %146 = vsyncpa [#allocation3], 1 }
 0x131   :  { %147 = vsyncpa [#allocation5], 1 }

</bundles_post_ra>
